<compile_context>
chip_gen: v7x
topology: tpu7x:2x2x1
jax: 0.10.0
libtpu: 0.0.40
codegen_flags: <defaults>
</compile_context>

<pallas_src>
import jax
import jax.numpy as jnp
from jax.experimental import pallas as pl
from jax.experimental.pallas import tpu as pltpu

_LANE = 128
_MiB = 1024 * 1024


def _round_up(a: int, b: int) -> int:
    return -(-a // b) * b


def _sublane_for(dtype) -> int:
    # 32-bit -> 8 rows per vreg, 16-bit -> 16, 8-bit -> 32 (sublane packing).
    itemsize = jnp.dtype(dtype).itemsize
    return max(8, 32 // max(itemsize, 1))


def _detect_policy():
    """Chip-aware block-size / VMEM policy; safe fallback if detection fails."""
    vmem_bytes = None
    try:
        info = pltpu.get_tpu_info()
        vmem_bytes = int(getattr(info, "vmem_capacity_bytes", 0)) or None
    except Exception:
        vmem_bytes = None
    if vmem_bytes is not None and vmem_bytes > 64 * _MiB:
        # v5e / v6e: 128 MiB physical VMEM, single TensorCore.
        # 4 buffers x 8 MiB = 32 MiB pipeline, well under the 64 MiB scoped limit.
        return {"block_bytes": 8 * _MiB, "vmem_limit": 64 * _MiB, "two_cores": True if False else False}
    if vmem_bytes is not None:
        # v7x: 64 MiB physical VMEM per TC, 2 TensorCores share the parallel axis.
        # 4 buffers x 6 MiB = 24 MiB, leaving headroom under the 40 MiB limit.
        return {"block_bytes": 6 * _MiB, "vmem_limit": 40 * _MiB, "two_cores": True}
    # Unknown backend: settings that are safe on every generation.
    return {"block_bytes": 6 * _MiB, "vmem_limit": 40 * _MiB, "two_cores": False}


_POLICY = _detect_policy()


def _h_swish_kernel(x_ref, o_ref):
    x = x_ref[...]
    dt = x.dtype
    three = jnp.asarray(3.0, dt)
    zero = jnp.asarray(0.0, dt)
    six = jnp.asarray(6.0, dt)
    inv6 = jnp.asarray(1.0 / 6.0, dt)
    # h_sigmoid(x) = relu6(x + 3) / 6 ; h_swish(x) = x * h_sigmoid(x)
    hs = jnp.minimum(jnp.maximum(x + three, zero), six) * inv6
    o_ref[...] = (x * hs).astype(o_ref.dtype)


def _choose_tile_rows(rows: int, sublane: int, itemsize: int) -> int:
    """Pick tile rows: big blocks to amortize per-step cost; even grid on 2-TC chips."""
    target = max(
        sublane,
        (_POLICY["block_bytes"] // (_LANE * itemsize)) // sublane * sublane,
    )
    if rows <= target:
        if _POLICY["two_cores"] and rows > sublane:
            # Split into 2 balanced steps so both v7x TensorCores get work.
            return _round_up(pl.cdiv(rows, 2), sublane)
        # Single full-array block (valid even when rows % 8 != 0).
        return rows
    tile = target
    if _POLICY["two_cores"]:
        steps = pl.cdiv(rows, tile)
        if 1 < steps < 16 and steps % 2 == 1:
            # Small odd step count would leave one TC with ~50% more work.
            tile = max(sublane, _round_up(pl.cdiv(rows, steps + 1), sublane))
    return tile


def _h_swish_2d(x2d: jax.Array) -> jax.Array:
    rows, lane = x2d.shape  # lane == 128
    dtype = x2d.dtype
    itemsize = jnp.dtype(dtype).itemsize
    sublane = _sublane_for(dtype)

    tile_rows = _choose_tile_rows(rows, sublane, itemsize)
    grid = (pl.cdiv(rows, tile_rows),)

    return pl.pallas_call(
        _h_swish_kernel,
        out_shape=jax.ShapeDtypeStruct((rows, lane), dtype),
        grid=grid,
        in_specs=[pl.BlockSpec((tile_rows, lane), lambda i: (i, 0))],
        out_specs=pl.BlockSpec((tile_rows, lane), lambda i: (i, 0)),
        cost_estimate=pl.CostEstimate(
            flops=5 * rows * lane,
            transcendentals=0,
            bytes_accessed=2 * rows * lane * itemsize,
        ),
        compiler_params=pltpu.CompilerParams(
            dimension_semantics=("parallel",),
            vmem_limit_bytes=_POLICY["vmem_limit"],
        ),
    )(x2d)


def _h_swish_jnp(x: jax.Array) -> jax.Array:
    # Used only for the tiny (<128 element) ragged tail.
    return (x * (jnp.clip(x + 3.0, 0.0, 6.0) * (1.0 / 6.0))).astype(x.dtype)


def _h_swish_impl(x: jax.Array) -> jax.Array:
    """Elementwise h_swish on an arbitrary-shaped (e.g. NCHW) tensor."""
    orig_shape = x.shape
    n = int(x.size)
    if n == 0:
        return x

    if n % _LANE == 0:
        # Fast path: contiguous reshape to a lane-dense (rows, 128) slab is a
        # free bitcast under jit.  Partial row-blocks are masked by Pallas, so
        # rows need not be a multiple of the sublane count.
        rows = n // _LANE
        return _h_swish_2d(x.reshape(rows, _LANE)).reshape(orig_shape)

    # Ragged tail (rare): run the kernel on the first n - n%128 elements and
    # handle the <128-element remainder with plain jnp.  No full-tensor
    # pad/slice passes.
    flat = x.reshape(-1)
    bulk = (n // _LANE) * _LANE
    if bulk == 0:
        return _h_swish_jnp(x)
    head = _h_swish_2d(flat[:bulk].reshape(bulk // _LANE, _LANE)).reshape(-1)
    tail = _h_swish_jnp(flat[bulk:])
    return jnp.concatenate([head, tail]).reshape(orig_shape)


# jit so the reshape plumbing fuses / becomes a bitcast instead of separate
# dispatches; shape-dependent Python logic above is static under jit.
h_swish = jax.jit(_h_swish_impl)


def h_swish_ref(x: jax.Array) -> jax.Array:
    return x * (jnp.clip(x + 3.0, 0.0, 6.0) / 6.0)


if __name__ == "__main__":
    key = jax.random.PRNGKey(0)
    # NCHW, small shape consistent with a MobileNetV3 activation tensor.
    x = jax.random.normal(key, (2, 4, 16, 16), dtype=jnp.float32) * 4.0

    y = h_swish(x)  # fast path (2048 % 128 == 0)
    jax.block_until_ready(y)
    assert y.shape == x.shape and y.dtype == x.dtype
    assert jnp.allclose(y, h_swish_ref(x), atol=1e-5, rtol=1e-5), "mismatch (fast path)"

    # Ragged-tail path (1155 elements: 1152 through the kernel + 3-element tail).
    x2 = jax.random.normal(jax.random.PRNGKey(1), (3, 5, 7, 11), dtype=jnp.float32) * 4.0
    y2 = h_swish(x2)
    jax.block_until_ready(y2)
    assert y2.shape == x2.shape and y2.dtype == x2.dtype
    assert jnp.allclose(y2, h_swish_ref(x2), atol=1e-5, rtol=1e-5), "mismatch (ragged path)"

    # bf16 fast path (16-row sublane packing).
    xb = (jax.random.normal(jax.random.PRNGKey(2), (2, 4, 16, 16)) * 4.0).astype(jnp.bfloat16)
    yb = h_swish(xb)
    jax.block_until_ready(yb)
    assert yb.dtype == jnp.bfloat16
    assert jnp.allclose(
        yb.astype(jnp.float32), h_swish_ref(xb.astype(jnp.float32)), atol=0.1, rtol=0.05
    ), "mismatch (bf16 path)"

    print("KERNEL_OK")
</pallas_src>

<mosaic_0001>
module attributes {stable_mosaic.version = 11 : i64} {
  func.func @_h_swish_kernel(%arg0: i32, %arg1: memref<16x128xf32, #tpu.memory_space<vmem>>, %arg2: memref<16x128xf32, #tpu.memory_space<vmem>>) attributes {dimension_semantics = [#tpu.dimension_semantics<parallel>], iteration_bounds = array<i64: 1>, scalar_prefetch = 0 : i64, scratch_operands = 0 : i64, tpu.core_type = #tpu.core_type<tc>, window_params = [{transform_indices = @transform_0, window_bounds = array<i64: 16, 128>}, {transform_indices = @transform_1, window_bounds = array<i64: 16, 128>}]} {
    %c0 = arith.constant 0 : index
    %c0_0 = arith.constant 0 : index
    %0 = vector.load %arg1[%c0, %c0_0] : memref<16x128xf32, #tpu.memory_space<vmem>>, vector<16x128xf32>
    %cst = arith.constant 3.000000e+00 : f32
    %1 = vector.broadcast %cst : f32 to vector<16x128xf32>
    %2 = arith.addf %0, %1 : vector<16x128xf32>
    %cst_1 = arith.constant 0.000000e+00 : f32
    %3 = vector.broadcast %cst_1 : f32 to vector<16x128xf32>
    %4 = arith.maximumf %2, %3 : vector<16x128xf32>
    %cst_2 = arith.constant 6.000000e+00 : f32
    %5 = vector.broadcast %cst_2 : f32 to vector<16x128xf32>
    %6 = arith.minimumf %4, %5 : vector<16x128xf32>
    %cst_3 = arith.constant 0.166666672 : f32
    %7 = vector.broadcast %cst_3 : f32 to vector<16x128xf32>
    %8 = arith.mulf %6, %7 : vector<16x128xf32>
    %9 = arith.mulf %0, %8 : vector<16x128xf32>
    %c0_4 = arith.constant 0 : index
    %c0_5 = arith.constant 0 : index
    %10 = vector.load %arg2[%c0_4, %c0_5] : memref<16x128xf32, #tpu.memory_space<vmem>>, vector<16x128xf32>
    tpu.vector_store %arg2[%c0_4, %c0_5], %9 {strides = array<i32>} : memref<16x128xf32, #tpu.memory_space<vmem>>, vector<16x128xf32>,
    return
  }
  func.func @transform_0(%arg0: i32) -> (i32, i32) {
    %c0_i32 = arith.constant 0 : i32
    %c0_i32_0 = arith.constant 0 : i32
    return %arg0, %c0_i32 : i32, i32
  }
  func.func @transform_1(%arg0: i32) -> (i32, i32) {
    %c0_i32 = arith.constant 0 : i32
    %c0_i32_0 = arith.constant 0 : i32
    return %arg0, %c0_i32 : i32, i32
  }
}

</mosaic_0001>

<bundles_post_ra>
// kernel: _h_swish_impl.1
= control target key start
LH: loop header
LB: loop body
LE: loop exit
PB: predicated region body
PF: predicated region fallthrough
CT: control target
= control target key end

     0   :  { %s48_s0 = inlined_call_operand.vmem [shape: f32[16,128], index: 0, kind: input, shape index: {}]   ;;  %s49_s1 = inlined_call_operand.vmem [shape: f32[16,128], index: 1, kind: output, shape index: {}]  }
   0x1   :  { %v8_v0 = vld [vmem:[%s48_s0] sm:$0xff]  ;;  %v9_v1 = vld [vmem:[%s48_s0 + $0x8] sm:$0xff] }
   0x2   :  { %v10_v2 = vadd.f32 3.0, %v8_v0  ;;  %v11_v3 = vadd.f32 3.0, %v9_v1 }
   0x4   :  { %v12_v4 = vmax.f32 %v10_v2, 0.0  ;;  %v13_v5 = vmax.f32 %v11_v3, 0.0 }
   0x6   :  { %v14_v6 = vmin.f32 %v12_v4, 6.0  ;;  %v15_v7 = vmin.f32 %v13_v5, 6.0 }
   0x8   :  { %v16_v8 = vmul.f32 0.16666667, %v14_v6  ;;  %v17_v9 = vmul.f32 0.16666667, %v15_v7 }
   0xa   :  { %v18_v10 = vmul.f32 %v16_v8, %v8_v0  ;;  %v19_v11 = vmul.f32 %v17_v9, %v9_v1 }
   0xc   :  { %20 = vst [vmem:[%s49_s1] sm:$0xff] %v18_v10  ;;  %21 = vst [vmem:[%s49_s1 + $0x8] sm:$0xff] %v19_v11 }

</bundles_post_ra>
